<compile_context>
chip_gen: v5e
topology: v5e:2x2
jax: 0.10.0
libtpu: 0.0.40
codegen_flags: <defaults>
</compile_context>

<pallas_src>
import functools
import math

import jax
import jax.numpy as jnp
import numpy as np
from jax.experimental import pallas as pl
from jax.experimental.pallas import tpu as pltpu


def _round_up(v: int, m: int) -> int:
    return ((v + m - 1) // m) * m


def _dft_matrices(n: int, n_pad: int, modes1: int, mp: int, dtype=jnp.bfloat16):
    """Low-mode rfft matrix F (N_p, 2*MP) and irfft matrix G (2*MP, N_p), norm='ortho'.

    F columns [0, modes1)        : cos(2*pi*n*k/N)/sqrt(N)      -> Re(rfft)
    F columns [MP, MP+modes1)    : -sin(2*pi*n*k/N)/sqrt(N)     -> Im(rfft)
    G rows    [0, modes1)        : w_k*cos(.)/sqrt(N)            (Hermitian weights)
    G rows    [MP, MP+modes1)    : -w_k*sin(.)/sqrt(N)
    All padding rows/columns are zero, so padded lanes are inert.
    (sin(2*pi*n*0/N)=0 and sin(pi*n)=0, so imaginary parts of DC / Nyquist bins
    are ignored exactly like torch.fft.irfft's C2R transform.)
    """
    nn = np.arange(n)[:, None]
    kk = np.arange(modes1)[None, :]
    ang = 2.0 * np.pi * nn * kk / n
    inv_sqrt_n = 1.0 / math.sqrt(n)

    f = np.zeros((n_pad, 2 * mp), np.float32)
    f[:n, :modes1] = np.cos(ang) * inv_sqrt_n
    f[:n, mp:mp + modes1] = -np.sin(ang) * inv_sqrt_n

    w = np.full((modes1,), 2.0, np.float32)
    w[0] = 1.0
    if n % 2 == 0 and modes1 == n // 2 + 1:
        w[-1] = 1.0  # Nyquist bin included
    g = np.zeros((2 * mp, n_pad), np.float32)
    g[:modes1, :n] = (w[:, None] * np.cos(ang.T)) * inv_sqrt_n
    g[mp:mp + modes1, :n] = -(w[:, None] * np.sin(ang.T)) * inv_sqrt_n

    return jnp.asarray(f, dtype), jnp.asarray(g, dtype)


def _pick_batch_tile(b: int, cin: int, cout: int, n: int) -> int:
    """Largest divisor of b that (a) leaves >= 2 grid steps when possible (so
    both v7x TensorCores get work and the pipeline overlaps DMA with compute),
    (b) keeps the f32 x/out blocks under 8 MiB, (c) stops growing once the
    matmul M dimension (tb*cin) is MXU-saturating."""
    target_rows = 512            # >= 2x 256-row MXU tiles on v6e/v7x
    max_block_bytes = 8 << 20
    cap = b // 2 if b >= 2 else 1
    best = 1
    for d in range(1, cap + 1):
        if b % d != 0:
            continue
        if d * max(cin, cout) * n * 4 > max_block_bytes:
            break
        best = d
        if d * cin >= target_rows:
            break
    return best


def _const_spec(shape, index_map):
    """BlockSpec for a grid-invariant operand: single-buffered (never refetched)."""
    try:
        return pl.BlockSpec(shape, index_map, pipeline_mode=pl.Buffered(1))
    except TypeError:  # very old BlockSpec signature; fall back to default
        return pl.BlockSpec(shape, index_map)


def _vmem_limit_bytes(footprint: int) -> int:
    try:
        cap = pltpu.get_tpu_info().vmem_capacity_bytes
    except Exception:  # noqa: BLE001 - conservative fallback (v7x-sized)
        cap = 64 << 20
    limit = max(2 * footprint + (4 << 20), 32 << 20)
    return int(min(limit, (cap * 3) // 4))


def _dft_conv1d_kernel(x_ref, f_ref, wr_ref, wi_ref, g_ref, o_ref, spec_ref, *,
                       add_input: bool):
    tb, cin, npad = x_ref.shape
    cout, mp = wr_ref.shape[1], wr_ref.shape[2]

    # ---- rfft (low modes only): one bf16 matmul over stacked (TB*Cin) rows ----
    x = x_ref[...].reshape(tb * cin, npad).astype(jnp.bfloat16)
    spec = jnp.dot(x, f_ref[...], preferred_element_type=jnp.float32)  # (TB*Cin, 2MP)
    spec = spec.reshape(tb, cin, 2 * mp)
    xr = spec[:, :, :mp]                                               # (TB, Cin, MP)
    xi = spec[:, :, mp:]

    # ---- complex channel mixing, chunked over Cout --------------------------
    # weights already encode (w - I) for keep_high, and are zero beyond modes1,
    # so no masking is needed here.  Each finished Cout chunk is cast once to
    # bf16 and stored straight into the scratch that feeds the irfft matmul.
    oc = min(cout, 8)
    for o0 in range(0, cout, oc):
        wr_c = wr_ref[:, o0:o0 + oc, :]                                # (Cin, OC, MP)
        wi_c = wi_ref[:, o0:o0 + oc, :]
        acc_r = jnp.zeros((tb, oc, mp), jnp.float32)
        acc_i = jnp.zeros((tb, oc, mp), jnp.float32)
        for i in range(cin):
            xri = xr[:, i:i + 1, :]                                    # (TB, 1, MP)
            xii = xi[:, i:i + 1, :]
            wri = wr_c[i:i + 1]                                        # (1, OC, MP)
            wii = wi_c[i:i + 1]
            acc_r = acc_r + (xri * wri - xii * wii)
            acc_i = acc_i + (xri * wii + xii * wri)
        spec_ref[:, o0:o0 + oc, :mp] = acc_r.astype(jnp.bfloat16)
        spec_ref[:, o0:o0 + oc, mp:] = acc_i.astype(jnp.bfloat16)

    # ---- irfft (low modes only): one bf16 matmul, 2*MP contraction ----------
    s2 = spec_ref[...].reshape(tb * cout, 2 * mp)                      # bf16
    y = jnp.dot(s2, g_ref[...], preferred_element_type=jnp.float32)   # (TB*Cout, Np)
    y = y.reshape(tb, cout, npad)
    if add_input:
        # keep_high: exact high-mode passthrough, y = x + irfft_low(delta)
        y = y + x_ref[...]
    o_ref[...] = y.astype(o_ref.dtype)


def dft_conv1d(x, weights1, *, modes1: int, keep_high: bool = True):
    """x: (B, Cin, N) f32.  weights1: (Cin, Cout, modes1, 2) f32 (real/imag)."""
    # TODO(synk): use_rfft=False (full complex fft/ifft) branch not implemented;
    # this kernel covers the module's default use_rfft=True path.
    b, cin, n = x.shape
    cout = weights1.shape[1]
    k = n // 2 + 1
    assert modes1 <= k, "modes1 must be <= N//2 + 1"
    if keep_high:
        assert cin == cout, (
            "keep_high=True high-mode passthrough requires in_channels == out_channels")

    cin_p = _round_up(cin, 8)          # sublane-aligned channels (view-only reshapes)
    cout_p = _round_up(cout, 8)
    n_p = _round_up(n, 128)            # lane-aligned spatial dim (unmasked stores)
    mp = _round_up(modes1, 128)        # lane-aligned low-mode slab

    # pad x (zero rows/cols contribute nothing to the DFT contraction)
    if (cin_p, n_p) != (cin, n):
        x_p = jnp.zeros((b, cin_p, n_p), x.dtype).at[:, :cin, :n].set(x)
    else:
        x_p = x

    f_mat, g_mat = _dft_matrices(n, n_p, modes1, mp, jnp.bfloat16)

    # mixing weights padded to (Cin_p, Cout_p, MP); zero beyond modes1 / real channels.
    wr = jnp.zeros((cin_p, cout_p, mp), jnp.float32).at[:cin, :cout, :modes1].set(
        weights1[..., 0].astype(jnp.float32))
    wi = jnp.zeros((cin_p, cout_p, mp), jnp.float32).at[:cin, :cout, :modes1].set(
        weights1[..., 1].astype(jnp.float32))
    if keep_high:
        # fold the high-mode passthrough into the weights:  delta = x_ft @ (w - I),
        # then y = x + irfft_low(delta).  (Identity only on the low modes.)
        eye = jnp.eye(cin_p, cout_p, dtype=jnp.float32)[:, :, None]
        low = (jnp.arange(mp) < modes1).astype(jnp.float32)[None, None, :]
        wr = wr - eye * low

    tb = _pick_batch_tile(b, cin_p, cout_p, n_p)
    grid = (b // tb,)

    # VMEM footprint: double-buffered x/out blocks + single-buffered constants
    # + weights + bf16 spectrum scratch.
    footprint = (
        2 * tb * cin_p * n_p * 4 +          # x blocks (f32, double buffered)
        2 * tb * cout_p * n_p * 4 +         # out blocks
        (f_mat.size + g_mat.size) * 2 +     # F, G (bf16, single buffered)
        (wr.size + wi.size) * 4 +           # weights (f32, single buffered)
        tb * cout_p * 2 * mp * 2)           # bf16 spectrum scratch
    vmem_limit = _vmem_limit_bytes(int(footprint))

    kernel = functools.partial(_dft_conv1d_kernel, add_input=keep_high)
    out_p = pl.pallas_call(
        kernel,
        out_shape=jax.ShapeDtypeStruct((b, cout_p, n_p), x.dtype),
        grid_spec=pltpu.PrefetchScalarGridSpec(
            num_scalar_prefetch=0,
            grid=grid,
            in_specs=[
                pl.BlockSpec((tb, cin_p, n_p), lambda i: (i, 0, 0)),
                _const_spec((n_p, 2 * mp), lambda i: (0, 0)),
                _const_spec((cin_p, cout_p, mp), lambda i: (0, 0, 0)),
                _const_spec((cin_p, cout_p, mp), lambda i: (0, 0, 0)),
                _const_spec((2 * mp, n_p), lambda i: (0, 0)),
            ],
            out_specs=pl.BlockSpec((tb, cout_p, n_p), lambda i: (i, 0, 0)),
            scratch_shapes=[pltpu.VMEM((tb, cout_p, 2 * mp), jnp.bfloat16)],
        ),
        compiler_params=pltpu.CompilerParams(
            dimension_semantics=("parallel",),
            vmem_limit_bytes=vmem_limit,
        ),
    )(x_p, f_mat, wr, wi, g_mat)

    if (cout_p, n_p) != (cout, n):
        out_p = out_p[:, :cout, :n]
    return out_p


if __name__ == "__main__":
    B, C, N, MODES1 = 2, 8, 64, 8          # in_channels == out_channels (needed for keep_high)
    SIGNAL_RESOLUTION = 1024               # module default
    key = jax.random.PRNGKey(0)
    kx, kw = jax.random.split(key)

    x = jax.random.normal(kx, (B, C, N), dtype=jnp.float32)
    # weight_init=2 ("vp"): scale = sqrt(1/in_channels * signal_resolution / (2*modes1))
    scale = math.sqrt(1.0 / C * SIGNAL_RESOLUTION / (2 * MODES1))
    weights1 = scale * jax.random.normal(kw, (C, C, MODES1, 2), dtype=jnp.float32)

    # ---- keep_high=True (module default) ------------------------------------
    y = dft_conv1d(x, weights1, modes1=MODES1, keep_high=True)
    y = jax.block_until_ready(y)
    assert y.shape == (B, C, N) and y.dtype == jnp.float32

    x_ft = jnp.fft.rfft(x, norm="ortho")
    w_c = weights1[..., 0] + 1j * weights1[..., 1]
    out_ft = jnp.zeros((B, C, x_ft.shape[-1]), dtype=x_ft.dtype)
    out_ft = out_ft.at[..., :MODES1].set(
        jnp.einsum("bix,iox->box", x_ft[..., :MODES1], w_c))
    out_ft = out_ft.at[..., MODES1:].set(x_ft[..., MODES1:])
    y_ref = jnp.fft.irfft(out_ft, n=N, norm="ortho")

    data_scale = float(jnp.max(jnp.abs(y_ref)))
    max_err = float(jnp.max(jnp.abs(y - y_ref)))
    assert max_err <= 2e-2 * data_scale + 1e-2, (max_err, data_scale)

    # ---- keep_high=False, cin != cout (exercises Cout chunking) -------------
    C_OUT = 16
    w2 = scale * jax.random.normal(jax.random.PRNGKey(1), (C, C_OUT, MODES1, 2),
                                   dtype=jnp.float32)
    y2 = jax.block_until_ready(dft_conv1d(x, w2, modes1=MODES1, keep_high=False))
    assert y2.shape == (B, C_OUT, N)

    w2_c = w2[..., 0] + 1j * w2[..., 1]
    out_ft2 = jnp.zeros((B, C_OUT, x_ft.shape[-1]), dtype=x_ft.dtype)
    out_ft2 = out_ft2.at[..., :MODES1].set(
        jnp.einsum("bix,iox->box", x_ft[..., :MODES1], w2_c))
    y2_ref = jnp.fft.irfft(out_ft2, n=N, norm="ortho")

    data_scale2 = float(jnp.max(jnp.abs(y2_ref)))
    max_err2 = float(jnp.max(jnp.abs(y2 - y2_ref)))
    assert max_err2 <= 2e-2 * data_scale2 + 1e-2, (max_err2, data_scale2)

    print("KERNEL_OK")
</pallas_src>

<mosaic_0001>
module attributes {stable_mosaic.version = 11 : i64} {
  func.func @_dft_conv1d_kernel(%arg0: i32, %arg1: memref<1x8x128xf32, #tpu.memory_space<vmem>>, %arg2: memref<128x256xbf16, #tpu.memory_space<vmem>>, %arg3: memref<8x8x128xf32, #tpu.memory_space<vmem>>, %arg4: memref<8x8x128xf32, #tpu.memory_space<vmem>>, %arg5: memref<256x128xbf16, #tpu.memory_space<vmem>>, %arg6: memref<1x8x128xf32, #tpu.memory_space<vmem>>, %arg7: memref<1x8x256xbf16, #tpu.memory_space<vmem>>) attributes {dimension_semantics = [#tpu.dimension_semantics<parallel>], iteration_bounds = array<i64: 2>, scalar_prefetch = 0 : i64, scratch_operands = 1 : i64, tpu.core_type = #tpu.core_type<tc>, window_params = [{transform_indices = @transform_0, window_bounds = array<i64: 1, 8, 128>}, {pipeline_mode = #tpu.pipeline_mode<synchronous>, transform_indices = @transform_1, window_bounds = array<i64: 128, 256>}, {pipeline_mode = #tpu.pipeline_mode<synchronous>, transform_indices = @transform_2, window_bounds = array<i64: 8, 8, 128>}, {pipeline_mode = #tpu.pipeline_mode<synchronous>, transform_indices = @transform_3, window_bounds = array<i64: 8, 8, 128>}, {pipeline_mode = #tpu.pipeline_mode<synchronous>, transform_indices = @transform_4, window_bounds = array<i64: 256, 128>}, {transform_indices = @transform_5, window_bounds = array<i64: 1, 8, 128>}]} {
    %c0 = arith.constant 0 : index
    %c0_0 = arith.constant 0 : index
    %c0_1 = arith.constant 0 : index
    %0 = vector.load %arg1[%c0, %c0_0, %c0_1] : memref<1x8x128xf32, #tpu.memory_space<vmem>>, vector<1x8x128xf32>
    %1 = vector.shape_cast %0 : vector<1x8x128xf32> to vector<8x128xf32>
    %2 = arith.truncf %1 : vector<8x128xf32> to vector<8x128xbf16>
    %c0_2 = arith.constant 0 : index
    %c0_3 = arith.constant 0 : index
    %3 = vector.load %arg2[%c0_2, %c0_3] : memref<128x256xbf16, #tpu.memory_space<vmem>>, vector<128x256xbf16>
    %cst = arith.constant dense<0.000000e+00> : vector<8x256xf32>
    %4 = tpu.matmul %2, %3, %cst {dimension_numbers = #tpu.dot_dimension_numbers<[1], [0], [0], [1], [0, 0, 1, 1], [], []>} : vector<8x128xbf16>, vector<128x256xbf16>, vector<8x256xf32> -> vector<8x256xf32>
    %5 = vector.shape_cast %4 : vector<8x256xf32> to vector<1x8x256xf32>
    %6 = vector.extract_strided_slice %5 {offsets = [0, 0, 0], sizes = [1, 8, 128], strides = [1, 1, 1]} : vector<1x8x256xf32> to vector<1x8x128xf32>
    %7 = vector.extract_strided_slice %5 {offsets = [0, 0, 128], sizes = [1, 8, 128], strides = [1, 1, 1]} : vector<1x8x256xf32> to vector<1x8x128xf32>
    %c0_4 = arith.constant 0 : index
    %c0_5 = arith.constant 0 : index
    %c0_6 = arith.constant 0 : index
    %8 = vector.load %arg3[%c0_4, %c0_5, %c0_6] : memref<8x8x128xf32, #tpu.memory_space<vmem>>, vector<8x8x128xf32>
    %c0_7 = arith.constant 0 : index
    %c0_8 = arith.constant 0 : index
    %c0_9 = arith.constant 0 : index
    %9 = vector.load %arg4[%c0_7, %c0_8, %c0_9] : memref<8x8x128xf32, #tpu.memory_space<vmem>>, vector<8x8x128xf32>
    %cst_10 = arith.constant 0.000000e+00 : f32
    %10 = vector.broadcast %cst_10 : f32 to vector<1x8x128xf32>
    %cst_11 = arith.constant 0.000000e+00 : f32
    %11 = vector.broadcast %cst_11 : f32 to vector<1x8x128xf32>
    %12 = vector.extract_strided_slice %6 {offsets = [0, 0, 0], sizes = [1, 1, 128], strides = [1, 1, 1]} : vector<1x8x128xf32> to vector<1x1x128xf32>
    %13 = vector.extract_strided_slice %7 {offsets = [0, 0, 0], sizes = [1, 1, 128], strides = [1, 1, 1]} : vector<1x8x128xf32> to vector<1x1x128xf32>
    %14 = vector.extract_strided_slice %8 {offsets = [0, 0, 0], sizes = [1, 8, 128], strides = [1, 1, 1]} : vector<8x8x128xf32> to vector<1x8x128xf32>
    %15 = vector.extract_strided_slice %9 {offsets = [0, 0, 0], sizes = [1, 8, 128], strides = [1, 1, 1]} : vector<8x8x128xf32> to vector<1x8x128xf32>
    %16 = vector.broadcast %12 : vector<1x1x128xf32> to vector<1x8x128xf32>
    %17 = arith.mulf %16, %14 : vector<1x8x128xf32>
    %18 = vector.broadcast %13 : vector<1x1x128xf32> to vector<1x8x128xf32>
    %19 = arith.mulf %18, %15 : vector<1x8x128xf32>
    %20 = arith.subf %17, %19 : vector<1x8x128xf32>
    %21 = arith.addf %10, %20 : vector<1x8x128xf32>
    %22 = vector.broadcast %12 : vector<1x1x128xf32> to vector<1x8x128xf32>
    %23 = arith.mulf %22, %15 : vector<1x8x128xf32>
    %24 = vector.broadcast %13 : vector<1x1x128xf32> to vector<1x8x128xf32>
    %25 = arith.mulf %24, %14 : vector<1x8x128xf32>
    %26 = arith.addf %23, %25 : vector<1x8x128xf32>
    %27 = arith.addf %11, %26 : vector<1x8x128xf32>
    %28 = vector.extract_strided_slice %6 {offsets = [0, 1, 0], sizes = [1, 1, 128], strides = [1, 1, 1]} : vector<1x8x128xf32> to vector<1x1x128xf32>
    %29 = vector.extract_strided_slice %7 {offsets = [0, 1, 0], sizes = [1, 1, 128], strides = [1, 1, 1]} : vector<1x8x128xf32> to vector<1x1x128xf32>
    %30 = vector.extract_strided_slice %8 {offsets = [1, 0, 0], sizes = [1, 8, 128], strides = [1, 1, 1]} : vector<8x8x128xf32> to vector<1x8x128xf32>
    %31 = vector.extract_strided_slice %9 {offsets = [1, 0, 0], sizes = [1, 8, 128], strides = [1, 1, 1]} : vector<8x8x128xf32> to vector<1x8x128xf32>
    %32 = vector.broadcast %28 : vector<1x1x128xf32> to vector<1x8x128xf32>
    %33 = arith.mulf %32, %30 : vector<1x8x128xf32>
    %34 = vector.broadcast %29 : vector<1x1x128xf32> to vector<1x8x128xf32>
    %35 = arith.mulf %34, %31 : vector<1x8x128xf32>
    %36 = arith.subf %33, %35 : vector<1x8x128xf32>
    %37 = arith.addf %21, %36 : vector<1x8x128xf32>
    %38 = vector.broadcast %28 : vector<1x1x128xf32> to vector<1x8x128xf32>
    %39 = arith.mulf %38, %31 : vector<1x8x128xf32>
    %40 = vector.broadcast %29 : vector<1x1x128xf32> to vector<1x8x128xf32>
    %41 = arith.mulf %40, %30 : vector<1x8x128xf32>
    %42 = arith.addf %39, %41 : vector<1x8x128xf32>
    %43 = arith.addf %27, %42 : vector<1x8x128xf32>
    %44 = vector.extract_strided_slice %6 {offsets = [0, 2, 0], sizes = [1, 1, 128], strides = [1, 1, 1]} : vector<1x8x128xf32> to vector<1x1x128xf32>
    %45 = vector.extract_strided_slice %7 {offsets = [0, 2, 0], sizes = [1, 1, 128], strides = [1, 1, 1]} : vector<1x8x128xf32> to vector<1x1x128xf32>
    %46 = vector.extract_strided_slice %8 {offsets = [2, 0, 0], sizes = [1, 8, 128], strides = [1, 1, 1]} : vector<8x8x128xf32> to vector<1x8x128xf32>
    %47 = vector.extract_strided_slice %9 {offsets = [2, 0, 0], sizes = [1, 8, 128], strides = [1, 1, 1]} : vector<8x8x128xf32> to vector<1x8x128xf32>
    %48 = vector.broadcast %44 : vector<1x1x128xf32> to vector<1x8x128xf32>
    %49 = arith.mulf %48, %46 : vector<1x8x128xf32>
    %50 = vector.broadcast %45 : vector<1x1x128xf32> to vector<1x8x128xf32>
    %51 = arith.mulf %50, %47 : vector<1x8x128xf32>
    %52 = arith.subf %49, %51 : vector<1x8x128xf32>
    %53 = arith.addf %37, %52 : vector<1x8x128xf32>
    %54 = vector.broadcast %44 : vector<1x1x128xf32> to vector<1x8x128xf32>
    %55 = arith.mulf %54, %47 : vector<1x8x128xf32>
    %56 = vector.broadcast %45 : vector<1x1x128xf32> to vector<1x8x128xf32>
    %57 = arith.mulf %56, %46 : vector<1x8x128xf32>
    %58 = arith.addf %55, %57 : vector<1x8x128xf32>
    %59 = arith.addf %43, %58 : vector<1x8x128xf32>
    %60 = vector.extract_strided_slice %6 {offsets = [0, 3, 0], sizes = [1, 1, 128], strides = [1, 1, 1]} : vector<1x8x128xf32> to vector<1x1x128xf32>
    %61 = vector.extract_strided_slice %7 {offsets = [0, 3, 0], sizes = [1, 1, 128], strides = [1, 1, 1]} : vector<1x8x128xf32> to vector<1x1x128xf32>
    %62 = vector.extract_strided_slice %8 {offsets = [3, 0, 0], sizes = [1, 8, 128], strides = [1, 1, 1]} : vector<8x8x128xf32> to vector<1x8x128xf32>
    %63 = vector.extract_strided_slice %9 {offsets = [3, 0, 0], sizes = [1, 8, 128], strides = [1, 1, 1]} : vector<8x8x128xf32> to vector<1x8x128xf32>
    %64 = vector.broadcast %60 : vector<1x1x128xf32> to vector<1x8x128xf32>
    %65 = arith.mulf %64, %62 : vector<1x8x128xf32>
    %66 = vector.broadcast %61 : vector<1x1x128xf32> to vector<1x8x128xf32>
    %67 = arith.mulf %66, %63 : vector<1x8x128xf32>
    %68 = arith.subf %65, %67 : vector<1x8x128xf32>
    %69 = arith.addf %53, %68 : vector<1x8x128xf32>
    %70 = vector.broadcast %60 : vector<1x1x128xf32> to vector<1x8x128xf32>
    %71 = arith.mulf %70, %63 : vector<1x8x128xf32>
    %72 = vector.broadcast %61 : vector<1x1x128xf32> to vector<1x8x128xf32>
    %73 = arith.mulf %72, %62 : vector<1x8x128xf32>
    %74 = arith.addf %71, %73 : vector<1x8x128xf32>
    %75 = arith.addf %59, %74 : vector<1x8x128xf32>
    %76 = vector.extract_strided_slice %6 {offsets = [0, 4, 0], sizes = [1, 1, 128], strides = [1, 1, 1]} : vector<1x8x128xf32> to vector<1x1x128xf32>
    %77 = vector.extract_strided_slice %7 {offsets = [0, 4, 0], sizes = [1, 1, 128], strides = [1, 1, 1]} : vector<1x8x128xf32> to vector<1x1x128xf32>
    %78 = vector.extract_strided_slice %8 {offsets = [4, 0, 0], sizes = [1, 8, 128], strides = [1, 1, 1]} : vector<8x8x128xf32> to vector<1x8x128xf32>
    %79 = vector.extract_strided_slice %9 {offsets = [4, 0, 0], sizes = [1, 8, 128], strides = [1, 1, 1]} : vector<8x8x128xf32> to vector<1x8x128xf32>
    %80 = vector.broadcast %76 : vector<1x1x128xf32> to vector<1x8x128xf32>
    %81 = arith.mulf %80, %78 : vector<1x8x128xf32>
    %82 = vector.broadcast %77 : vector<1x1x128xf32> to vector<1x8x128xf32>
    %83 = arith.mulf %82, %79 : vector<1x8x128xf32>
    %84 = arith.subf %81, %83 : vector<1x8x128xf32>
    %85 = arith.addf %69, %84 : vector<1x8x128xf32>
    %86 = vector.broadcast %76 : vector<1x1x128xf32> to vector<1x8x128xf32>
    %87 = arith.mulf %86, %79 : vector<1x8x128xf32>
    %88 = vector.broadcast %77 : vector<1x1x128xf32> to vector<1x8x128xf32>
    %89 = arith.mulf %88, %78 : vector<1x8x128xf32>
    %90 = arith.addf %87, %89 : vector<1x8x128xf32>
    %91 = arith.addf %75, %90 : vector<1x8x128xf32>
    %92 = vector.extract_strided_slice %6 {offsets = [0, 5, 0], sizes = [1, 1, 128], strides = [1, 1, 1]} : vector<1x8x128xf32> to vector<1x1x128xf32>
    %93 = vector.extract_strided_slice %7 {offsets = [0, 5, 0], sizes = [1, 1, 128], strides = [1, 1, 1]} : vector<1x8x128xf32> to vector<1x1x128xf32>
    %94 = vector.extract_strided_slice %8 {offsets = [5, 0, 0], sizes = [1, 8, 128], strides = [1, 1, 1]} : vector<8x8x128xf32> to vector<1x8x128xf32>
    %95 = vector.extract_strided_slice %9 {offsets = [5, 0, 0], sizes = [1, 8, 128], strides = [1, 1, 1]} : vector<8x8x128xf32> to vector<1x8x128xf32>
    %96 = vector.broadcast %92 : vector<1x1x128xf32> to vector<1x8x128xf32>
    %97 = arith.mulf %96, %94 : vector<1x8x128xf32>
    %98 = vector.broadcast %93 : vector<1x1x128xf32> to vector<1x8x128xf32>
    %99 = arith.mulf %98, %95 : vector<1x8x128xf32>
    %100 = arith.subf %97, %99 : vector<1x8x128xf32>
    %101 = arith.addf %85, %100 : vector<1x8x128xf32>
    %102 = vector.broadcast %92 : vector<1x1x128xf32> to vector<1x8x128xf32>
    %103 = arith.mulf %102, %95 : vector<1x8x128xf32>
    %104 = vector.broadcast %93 : vector<1x1x128xf32> to vector<1x8x128xf32>
    %105 = arith.mulf %104, %94 : vector<1x8x128xf32>
    %106 = arith.addf %103, %105 : vector<1x8x128xf32>
    %107 = arith.addf %91, %106 : vector<1x8x128xf32>
    %108 = vector.extract_strided_slice %6 {offsets = [0, 6, 0], sizes = [1, 1, 128], strides = [1, 1, 1]} : vector<1x8x128xf32> to vector<1x1x128xf32>
    %109 = vector.extract_strided_slice %7 {offsets = [0, 6, 0], sizes = [1, 1, 128], strides = [1, 1, 1]} : vector<1x8x128xf32> to vector<1x1x128xf32>
    %110 = vector.extract_strided_slice %8 {offsets = [6, 0, 0], sizes = [1, 8, 128], strides = [1, 1, 1]} : vector<8x8x128xf32> to vector<1x8x128xf32>
    %111 = vector.extract_strided_slice %9 {offsets = [6, 0, 0], sizes = [1, 8, 128], strides = [1, 1, 1]} : vector<8x8x128xf32> to vector<1x8x128xf32>
    %112 = vector.broadcast %108 : vector<1x1x128xf32> to vector<1x8x128xf32>
    %113 = arith.mulf %112, %110 : vector<1x8x128xf32>
    %114 = vector.broadcast %109 : vector<1x1x128xf32> to vector<1x8x128xf32>
    %115 = arith.mulf %114, %111 : vector<1x8x128xf32>
    %116 = arith.subf %113, %115 : vector<1x8x128xf32>
    %117 = arith.addf %101, %116 : vector<1x8x128xf32>
    %118 = vector.broadcast %108 : vector<1x1x128xf32> to vector<1x8x128xf32>
    %119 = arith.mulf %118, %111 : vector<1x8x128xf32>
    %120 = vector.broadcast %109 : vector<1x1x128xf32> to vector<1x8x128xf32>
    %121 = arith.mulf %120, %110 : vector<1x8x128xf32>
    %122 = arith.addf %119, %121 : vector<1x8x128xf32>
    %123 = arith.addf %107, %122 : vector<1x8x128xf32>
    %124 = vector.extract_strided_slice %6 {offsets = [0, 7, 0], sizes = [1, 1, 128], strides = [1, 1, 1]} : vector<1x8x128xf32> to vector<1x1x128xf32>
    %125 = vector.extract_strided_slice %7 {offsets = [0, 7, 0], sizes = [1, 1, 128], strides = [1, 1, 1]} : vector<1x8x128xf32> to vector<1x1x128xf32>
    %126 = vector.extract_strided_slice %8 {offsets = [7, 0, 0], sizes = [1, 8, 128], strides = [1, 1, 1]} : vector<8x8x128xf32> to vector<1x8x128xf32>
    %127 = vector.extract_strided_slice %9 {offsets = [7, 0, 0], sizes = [1, 8, 128], strides = [1, 1, 1]} : vector<8x8x128xf32> to vector<1x8x128xf32>
    %128 = vector.broadcast %124 : vector<1x1x128xf32> to vector<1x8x128xf32>
    %129 = arith.mulf %128, %126 : vector<1x8x128xf32>
    %130 = vector.broadcast %125 : vector<1x1x128xf32> to vector<1x8x128xf32>
    %131 = arith.mulf %130, %127 : vector<1x8x128xf32>
    %132 = arith.subf %129, %131 : vector<1x8x128xf32>
    %133 = arith.addf %117, %132 : vector<1x8x128xf32>
    %134 = vector.broadcast %124 : vector<1x1x128xf32> to vector<1x8x128xf32>
    %135 = arith.mulf %134, %127 : vector<1x8x128xf32>
    %136 = vector.broadcast %125 : vector<1x1x128xf32> to vector<1x8x128xf32>
    %137 = arith.mulf %136, %126 : vector<1x8x128xf32>
    %138 = arith.addf %135, %137 : vector<1x8x128xf32>
    %139 = arith.addf %123, %138 : vector<1x8x128xf32>
    %140 = arith.truncf %133 : vector<1x8x128xf32> to vector<1x8x128xbf16>
    %c0_12 = arith.constant 0 : index
    %c0_13 = arith.constant 0 : index
    %c0_14 = arith.constant 0 : index
    %141 = vector.load %arg7[%c0_12, %c0_13, %c0_14] : memref<1x8x256xbf16, #tpu.memory_space<vmem>>, vector<1x8x128xbf16>
    tpu.vector_store %arg7[%c0_12, %c0_13, %c0_14], %140 {strides = array<i32>} : memref<1x8x256xbf16, #tpu.memory_space<vmem>>, vector<1x8x128xbf16>,
    %142 = arith.truncf %139 : vector<1x8x128xf32> to vector<1x8x128xbf16>
    %c0_15 = arith.constant 0 : index
    %c0_16 = arith.constant 0 : index
    %c128 = arith.constant 128 : index
    %143 = vector.load %arg7[%c0_15, %c0_16, %c128] : memref<1x8x256xbf16, #tpu.memory_space<vmem>>, vector<1x8x128xbf16>
    tpu.vector_store %arg7[%c0_15, %c0_16, %c128], %142 {strides = array<i32>} : memref<1x8x256xbf16, #tpu.memory_space<vmem>>, vector<1x8x128xbf16>,
    %c0_17 = arith.constant 0 : index
    %c0_18 = arith.constant 0 : index
    %c0_19 = arith.constant 0 : index
    %144 = vector.load %arg7[%c0_17, %c0_18, %c0_19] : memref<1x8x256xbf16, #tpu.memory_space<vmem>>, vector<1x8x256xbf16>
    %145 = vector.shape_cast %144 : vector<1x8x256xbf16> to vector<8x256xbf16>
    %c0_20 = arith.constant 0 : index
    %c0_21 = arith.constant 0 : index
    %146 = vector.load %arg5[%c0_20, %c0_21] : memref<256x128xbf16, #tpu.memory_space<vmem>>, vector<256x128xbf16>
    %cst_22 = arith.constant dense<0.000000e+00> : vector<8x128xf32>
    %147 = tpu.matmul %145, %146, %cst_22 {dimension_numbers = #tpu.dot_dimension_numbers<[1], [0], [0], [1], [0, 0, 1, 1], [], []>} : vector<8x256xbf16>, vector<256x128xbf16>, vector<8x128xf32> -> vector<8x128xf32>
    %148 = vector.shape_cast %147 : vector<8x128xf32> to vector<1x8x128xf32>
    %c0_23 = arith.constant 0 : index
    %c0_24 = arith.constant 0 : index
    %c0_25 = arith.constant 0 : index
    %149 = vector.load %arg1[%c0_23, %c0_24, %c0_25] : memref<1x8x128xf32, #tpu.memory_space<vmem>>, vector<1x8x128xf32>
    %150 = arith.addf %148, %149 : vector<1x8x128xf32>
    %c0_26 = arith.constant 0 : index
    %c0_27 = arith.constant 0 : index
    %c0_28 = arith.constant 0 : index
    %151 = vector.load %arg6[%c0_26, %c0_27, %c0_28] : memref<1x8x128xf32, #tpu.memory_space<vmem>>, vector<1x8x128xf32>
    tpu.vector_store %arg6[%c0_26, %c0_27, %c0_28], %150 {strides = array<i32>} : memref<1x8x128xf32, #tpu.memory_space<vmem>>, vector<1x8x128xf32>,
    return
  }
  func.func @transform_0(%arg0: i32) -> (i32, i32, i32) {
    %c0_i32 = arith.constant 0 : i32
    %c0_i32_0 = arith.constant 0 : i32
    %c0_i32_1 = arith.constant 0 : i32
    return %arg0, %c0_i32, %c0_i32_0 : i32, i32, i32
  }
  func.func @transform_1(%arg0: i32) -> (i32, i32) {
    %c0_i32 = arith.constant 0 : i32
    %c0_i32_0 = arith.constant 0 : i32
    %c0_i32_1 = arith.constant 0 : i32
    return %c0_i32, %c0_i32_0 : i32, i32
  }
  func.func @transform_2(%arg0: i32) -> (i32, i32, i32) {
    %c0_i32 = arith.constant 0 : i32
    %c0_i32_0 = arith.constant 0 : i32
    %c0_i32_1 = arith.constant 0 : i32
    %c0_i32_2 = arith.constant 0 : i32
    return %c0_i32, %c0_i32_0, %c0_i32_1 : i32, i32, i32
  }
  func.func @transform_3(%arg0: i32) -> (i32, i32, i32) {
    %c0_i32 = arith.constant 0 : i32
    %c0_i32_0 = arith.constant 0 : i32
    %c0_i32_1 = arith.constant 0 : i32
    %c0_i32_2 = arith.constant 0 : i32
    return %c0_i32, %c0_i32_0, %c0_i32_1 : i32, i32, i32
  }
  func.func @transform_4(%arg0: i32) -> (i32, i32) {
    %c0_i32 = arith.constant 0 : i32
    %c0_i32_0 = arith.constant 0 : i32
    %c0_i32_1 = arith.constant 0 : i32
    return %c0_i32, %c0_i32_0 : i32, i32
  }
  func.func @transform_5(%arg0: i32) -> (i32, i32, i32) {
    %c0_i32 = arith.constant 0 : i32
    %c0_i32_0 = arith.constant 0 : i32
    %c0_i32_1 = arith.constant 0 : i32
    return %arg0, %c0_i32, %c0_i32_0 : i32, i32, i32
  }
}

</mosaic_0001>

<bundles_post_ra>
// kernel: tpu_custom_call.1
= control target key start
LH: loop header
LB: loop body
LE: loop exit
PB: predicated region body
PF: predicated region fallthrough
CT: control target
= control target key end

     0   :  { %10 = vsyncpa [#allocation4], 0  ;;  %s1560_s0 = inlined_call_operand.hbm [shape: f32[2,8,128], index: 0, kind: input, shape index: {}]   ;;  %s1561_s1 = inlined_call_operand.hbm [shape: bf16[128,256], index: 1, kind: input, shape index: {}]   ;;  %s1562_s2 = inlined_call_operand.hbm [shape: f32[8,8,128], index: 2, kind: input, shape index: {}]   ;;  %s1563_s3 = inlined_call_operand.hbm [shape: f32[8,8,128], index: 3, kind: input, shape index: {}]   ;;  %s1564_s4 = inlined_call_operand.hbm [shape: bf16[256,128], index: 4, kind: input, shape index: {}]   ;;  %s1565_s5 = inlined_call_operand.hbm [shape: f32[2,8,128], index: 5, kind: output, shape index: {}]  }
   0x1   :  { %12 = vsyncpa [#allocation4 + $0x1], 0 }
   0x2   :  { %13 = vsyncpa [#allocation7], 0 }
   0x3   :  { %14 = vsyncpa [#allocation10], 0 }
   0x4   :  { %15 = vsyncpa [#allocation5], 0 }
   0x5   :  { %17 = vsyncpa [#allocation5 + $0x1], 0  ;;  %s1361_s18 = smov 0   ;;  %s1363_s19 = smov 0  }
   0x6   :  { %s1365_s20 = smov 0   ;;  %s1367_s21 = smov 0  }
   0x7 LB: > { %s175_s24 = sshll.u32 %s1561_s1, 4  ;;  %s1385_s25 = sadd.s32 4294967295, %s1321_s21   ;;  %s1321_s21 = sphi %s1367_s21, %s1577_s21   ;;  %s1317_s20 = sphi %s1365_s20, %s1576_s20   ;;  %s1313_s19 = sphi %s1363_s19, %s1575_s19   ;;  %s1309_s18 = sphi %s1361_s18, %s1574_s18   ;;  %s176_s24 = int_to_ptr.hbm [resolvable:$true] %s175_s24 }
   0x8   : > { %p822_p0 = scmp.ge.s32.totalorder %s1321_s21, 1  ;;  %p44_p1 = scmp.eq.s32.totalorder %s1385_s25, 0 }
   0x9   : > { %p164_p2 = scmp.lt.s32.totalorder %s1321_s21, 3  ;;  %s1323_s27 = smov [#allocation6]  }
   0xa   : > { %s177_s28 = sshll.u32 %s1323_s27, 4  ;;  %s203_s6 = sshll.u32 %s1563_s3, 4  ;;  %s178_s28 = int_to_ptr.vmem [resolvable:$true] %s177_s28  ;;  %s204_s6 = int_to_ptr.hbm [resolvable:$true] %s203_s6 }
   0xb   : > { %p1390_p3 = pnand %p822_p0, %p164_p2  ;;  %s189_s10 = sshll.u32 %s1562_s2, 4  ;;  %s190_s10 = int_to_ptr.hbm [resolvable:$true] %s189_s10 }
   0xc   : > { %s1324_s11 = smov [#allocation9]   ;;  %s1325_s13 = smov 128  }
   0xd   : > { %p1026_p4 = pneg %p1390_p3  ;;  %s205_s12 = sshll.u32 %s1324_s11, 4  ;;  %s206_s12 = int_to_ptr.vmem [resolvable:$true] %s205_s12 }
   0xe   : > { %s1326_s14 = smov 8   ;;  %s217_s17 = sshll.u32 %s1564_s4, 4  ;;  %s218_s17 = int_to_ptr.hbm [resolvable:$true] %s217_s17 }
   0xf   : > { %p1402_p6 = pnand %p1026_p4, %p44_p1  ;;  %s1327_s22 = smov [#allocation8]  }
  0x10   : > { %s191_s23 = sshll.u32 %s1327_s22, 4  ;;  %s1330_s29 = smov 4   ;;  %s192_s23 = int_to_ptr.vmem [resolvable:$true] %s191_s23 }
  0x11   : > { %1029 = dma.hbm_to_vmem [thread:$0]  (!%p1402_p6), %s176_s24, 2048, %s178_s28, [#allocation7], %s1325_s13, %s1325_s13, %s1326_s14  }
  0x12   : > { %1035 = dma.hbm_to_vmem [thread:$0]  (!%p1402_p6), %s204_s6, 1024, %s206_s12, [#allocation10], %s1325_s13, %s1325_s13, %s1326_s14  }
  0x13   : > { %1032 = dma.hbm_to_vmem [thread:$0]  (!%p1402_p6), %s190_s10, 1024, %s192_s23, [#allocation7], %s1325_s13, %s1325_s13, %s1326_s14  }
  0x14   : > { %s1328_s24 = smov [#allocation11]   ;;  %s1329_s28 = smov 64  }
  0x15   : > { %s219_s27 = sshll.u32 %s1328_s24, 4  ;;  %s821_s30 = sadd.s32 4294967294, %s1321_s21   ;;  %s220_s27 = int_to_ptr.vmem [resolvable:$true] %s219_s27 }
  0x16   : > { %1038 = dma.hbm_to_vmem [thread:$0]  (!%p1402_p6), %s218_s17, 2048, %s220_s27, [#allocation10], %s1329_s28, %s1329_s28, %s1330_s29  }
  0x17   : > { %s1422_s6 = sadd.s32 1, %s1321_s21   ;;  %s30_s9 = sadd.s32 1, %s1317_s20 }
  0x18   : > { %s27_s8 = ssub.s32 %s1321_s21, %s1422_s6  ;;  %p37_p8 = scmp.ne.s32.totalorder %s1317_s20, %s1313_s19 }
  0x19   : > { %p28_p7 = scmp.eq.s32.totalorder %s27_s8, 0  ;;  %p38_p9 = scmp.eq.s32.totalorder %s1321_s21, 0 }
  0x1a   : > { %p43_p10 = scmp.ne.s32.totalorder %s1313_s19, %s1309_s18  ;;  %p151_p13 = scmp.eq.s32.totalorder %s1385_s25, 1 }
  0x1b   : > { %s1433_s10 = scalar_select %p28_p7, %s1317_s20, %s30_s9  }
  0x1c   : > { %p1435_p11 = por %p38_p9, %p37_p8  ;;  %p1441_p12 = por %p44_p1, %p43_p10 }
  0x1d   : > { %p157_p0 = scmp.eq.s32.totalorder %s821_s30, 1  ;;  %p1051_p2 = scmp.lt.s32.totalorder %s1321_s21, 2 }
  0x1e   : > { %s233_s12 = sand.u32 1, %s1317_s20   ;;  %p1448_p4 = por %p151_p13, %p37_p8 }
  0x1f   : > { %p1452_p6 = por %p157_p0, %p43_p10  ;;  %s828_s15 = sshll.u32 %s233_s12, 3 }
  0x20   : > { %s829_s16 = sshll.u32 %s1321_s21, 3  ;;  %s237_s24 = scalar_lea.vmem [#allocation3], %s828_s15 }
  0x21   : > { %s241_s23 = scalar_lea.hbm %s1560_s0, %s829_s16  ;;  %s245_s27 = sshll.u32 %s237_s24, 4  ;;  %s246_s27 = int_to_ptr.vmem [resolvable:$true] %s245_s27 }
  0x22   : > { %s243_s28 = sshll.u32 %s241_s23, 4  ;;  %p1462_p7 = pnand %p1051_p2, %p1435_p11  ;;  %s244_s28 = int_to_ptr.hbm [resolvable:$true] %s243_s28 }
  0x23   : > { %s234_s30 = scalar_lea.sflag [#allocation4], %s233_s12  ;;  %s1217_s8 = sshra.s32 %s244_s28, 4  ;;  %s1218_s8 = int_to_ptr.hbm [resolvable:$true] %s1217_s8 }
  0x24   : > { %s1219_s9 = scalar_lea.hbm %s1218_s8, 8  ;;  %p1221_p9 = pneg %p1462_p7 }
  0x25   : > { %p1220_p8 = scmp.ne.s32.totalorder %s1218_s8, %s1219_s9  ;;  %s1224_s17 = scalar_lea.hbm %s1560_s0, 16 }
  0x26   : > { %p1225_p11 = scmp.lt.s32.totalorder %s1218_s8, %s1560_s0  ;;  %p1226_p0 = scmp.lt.s32.totalorder %s1224_s17, %s1219_s9 }
  0x27   : > { %p1222_p10 = pnand %p1221_p9, %p1220_p8 }
  0x28   : > { %p1227_p2 = por %p1226_p0, %p1225_p11 }
  0x29   : > { %p1223_p13 = pneg %p1222_p10 }
  0x2b   : > { %p1228_p5 = pnand %p1227_p2, %p1223_p13 }
  0x2d   : > { %1231 = shalt.err (!%p1228_p5)
}
  0x2e   : > { %1042 = dma.hbm_to_vmem [thread:$0]  (!%p1462_p7), %s244_s28, 128, %s246_s27, %s234_s30  }
  0x2f   : > { %254 = sbr.rel (%p1390_p3) target bundleno = 386 (0x182), region = 40  ;;  %s1479_s12 = sand.u32 (!%p1390_p3), 1, %s1313_s19  }
  0x30   : > { %s831_s23 = sshll.u32 (!%p1390_p3), %s1479_s12, 3  ;;  %s257_s24 = scalar_lea.sflag (!%p1390_p3), [#allocation4], %s1479_s12 }
  0x31   : > { %s1485_s8 = scalar_lea.vmem (!%p1390_p3), [#allocation3], %s831_s23 }
  0x34   : > { %1292 = dma.done.wait (%p1441_p12), %s257_s24, 128  }
  0x35   : > { %1294 = vsyncadd (%p1441_p12), %s257_s24, 4294967168 }
  0x36   : > { %1296 = dma.done.wait (%p44_p1), [#allocation7], 3072  }
  0x37   : > { %1298 = vsyncadd (%p44_p1), [#allocation7], 4294964224 }
  0x38   : > { %1300 = dma.done.wait (%p44_p1), [#allocation10], 3072  }
  0x39   : > { %1302 = vsyncadd (%p44_p1), [#allocation10], 4294964224  ;;  %v895_v0 = vld [vmem:[#allocation6 + $0x70] sm:$0xf]  ;;  %v984_v1 = vld [vmem:[#allocation6 + $0x74] sm:$0xf0] }
  0x3a   : > { %v983_v2 = vld [vmem:[#allocation6 + $0x74] sm:$0xf]  ;;  %v896_v3 = vor.u32 %v984_v1, %v895_v0  ;;  %v897_v4 = vld [vmem:[#allocation6 + $0x78] sm:$0xf0]  ;;  %v887_v5 = vld [vmem:[#allocation6 + $0x60] sm:$0xf] }
  0x3b   : > { %v982_v6 = vld [vmem:[#allocation6 + $0x64] sm:$0xf0]  ;;  %v900_v7 = vor.u32 %v983_v2, %v897_v4  ;;  %v981_v8 = vld [vmem:[#allocation6 + $0x64] sm:$0xf]  ;;  %v889_v9 = vld [vmem:[#allocation6 + $0x68] sm:$0xf0] }
  0x3c   : > { %406 = vmatpush.bf16.msra.mxu0 %v896_v3  ;;  %v888_v10 = vor.u32 %v982_v6, %v887_v5  ;;  %v892_v11 = vor.u32 %v981_v8, %v889_v9  ;;  %v879_v12 = vld [vmem:[#allocation6 + $0x50] sm:$0xf]  ;;  %v980_v13 = vld [vmem:[#allocation6 + $0x54] sm:$0xf0]  ;;  %v979_v14 = vld [vmem:[#allocation6 + $0x54] sm:$0xf] }
  0x3d   : > { %419 = vmatpush.bf16.msra.mxu1 %v900_v7  ;;  %v881_v15 = vld [vmem:[#allocation6 + $0x58] sm:$0xf0]  ;;  %v880_v16 = vor.u32 %v980_v13, %v879_v12  ;;  %v871_v18 = vld [vmem:[#allocation6 + $0x40] sm:$0xf]  ;;  %v978_v19 = vld [vmem:[#allocation6 + $0x44] sm:$0xf0] }
  0x3e   : > { %v884_v17 = vor.u32 %v979_v14, %v881_v15  ;;  %v977_v20 = vld [vmem:[#allocation6 + $0x44] sm:$0xf]  ;;  %v873_v21 = vld [vmem:[#allocation6 + $0x48] sm:$0xf0]  ;;  %v872_v22 = vor.u32 %v978_v19, %v871_v18  ;;  %v992_v23 = vld [vmem:[#allocation11 + $0x38] sm:$0xff]  ;;  %s966_s26 = sshll.u32 %s1385_s25, 3 }
  0x3f   : > { %v1000_v24 = vld [vmem:[#allocation11 + $0x78] sm:$0xff]  ;;  %v876_v25 = vor.u32 %v977_v20, %v873_v21  ;;  %v863_v26 = vld [vmem:[#allocation6 + $0x30] sm:$0xf]  ;;  %v975_v28 = vld [vmem:[#allocation6 + $0x34] sm:$0xf]  ;;  %668 = vmatpush.bf16.msra.mxu2 %v992_v23  ;;  %s708_s28 = scalar_lea.hbm %s1565_s5, %s966_s26  ;;  %s307_s29 = scalar_lea.vmem [#allocation12], %s831_s23 }
  0x40   : > { %407 = vmatpush.bf16.msra.mxu0 %v888_v10  ;;  %v976_v27 = vld [vmem:[#allocation6 + $0x34] sm:$0xf0]  ;;  %v865_v29 = vld [vmem:[#allocation6 + $0x38] sm:$0xf0]  ;;  %681 = vmatpush.bf16.msra.mxu3 %v1000_v24  ;;  %v855_v32 = vld [vmem:[#allocation6 + $0x20] sm:$0xf] }
  0x41   : > { %420 = vmatpush.bf16.msra.mxu1 %v892_v11  ;;  %v864_v30 = vor.u32 %v976_v27, %v863_v26  ;;  %v868_v31 = vor.u32 %v975_v28, %v865_v29  ;;  %v974_v33 = vld [vmem:[#allocation6 + $0x24] sm:$0xf0]  ;;  %v973_v34 = vld [vmem:[#allocation6 + $0x24] sm:$0xf]  ;;  %v857_v35 = vld [vmem:[#allocation6 + $0x28] sm:$0xf0] }
  0x42   : > { %v856_v36 = vor.u32 %v974_v33, %v855_v32  ;;  %v860_v37 = vor.u32 %v973_v34, %v857_v35  ;;  %v847_v38 = vld [vmem:[#allocation6 + $0x10] sm:$0xf]  ;;  %v972_v39 = vld [vmem:[#allocation6 + $0x14] sm:$0xf0]  ;;  %v971_v40 = vld [vmem:[#allocation6 + $0x14] sm:$0xf] }
  0x43   : > { %v849_v41 = vld [vmem:[#allocation6 + $0x18] sm:$0xf0]  ;;  %v848_v42 = vor.u32 %v972_v39, %v847_v38  ;;  %v839_v44 = vld [vmem:[#allocation6] sm:$0xf]  ;;  %v970_v45 = vld [vmem:[#allocation6 + $0x4] sm:$0xf0] }
  0x44   : > { %408 = vmatpush.bf16.msra.mxu0 %v880_v16  ;;  %v852_v43 = vor.u32 %v971_v40, %v849_v41  ;;  %v969_v46 = vld [vmem:[#allocation6 + $0x4] sm:$0xf]  ;;  %v841_v47 = vld [vmem:[#allocation6 + $0x8] sm:$0xf0]  ;;  %v840_v48 = vor.u32 %v970_v45, %v839_v44  ;;  %v1500_v49 = vld [vmem:[%s1485_s8] sm:$0xff]  ;;  %s710_s30 = sshll.u32 %s307_s29, 4  ;;  %s711_s30 = int_to_ptr.vmem [resolvable:$true] %s710_s30 }
  0x45   : > { %421 = vmatpush.bf16.msra.mxu1 %v884_v17  ;;  %v844_v50 = vor.u32 %v969_v46, %v841_v47  ;;  %v309_v51 = vpack.c.bf16 %v1500_v49, %v1500_v49  ;;  %v991_v52 = vld [vmem:[#allocation11 + $0x30] sm:$0xff]  ;;  %v990_v54 = vld [vmem:[#allocation11 + $0x28] sm:$0xff]  ;;  %v989_v56 = vld [vmem:[#allocation11 + $0x20] sm:$0xff]  ;;  %s712_s9 = sshll.u32 %s708_s28, 4  ;;  %s698_s15 = scalar_lea.sflag [#allocation5], %s1479_s12  ;;  %s713_s9 = int_to_ptr.hbm [resolvable:$true] %s712_s9 }
  0x46   : > { %v999_v53 = vld [vmem:[#allocation11 + $0x70] sm:$0xff]  ;;  %669 = vmatpush.bf16.msra.mxu2 %v991_v52  ;;  %v998_v55 = vld [vmem:[#allocation11 + $0x68] sm:$0xff]  ;;  %v997_v57 = vld [vmem:[#allocation11 + $0x60] sm:$0xff]  ;;  %s1261_s16 = sshra.s32 %s713_s9, 4  ;;  %s1267_s11 = scalar_lea.hbm %s1565_s5, 16  ;;  %s1262_s16 = int_to_ptr.hbm [resolvable:$true] %s1261_s16 }
  0x47   : > { %682 = vmatpush.bf16.msra.mxu3 %v999_v53  ;;  %v988_v58 = vld [vmem:[#allocation11 + $0x18] sm:$0xff]  ;;  %v987_v60 = vld [vmem:[#allocation11 + $0x10] sm:$0xff]  ;;  %v986_v62 = vld [vmem:[#allocation11 + $0x8] sm:$0xff]  ;;  %s1263_s25 = scalar_lea.hbm %s1262_s16, 8  ;;  %p1268_p12 = scmp.lt.s32.totalorder %s1262_s16, %s1565_s5 }
  0x48   : > { %409 = vmatpush.bf16.msra.mxu0 %v872_v22  ;;  %v996_v59 = vld [vmem:[#allocation11 + $0x58] sm:$0xff]  ;;  %v995_v61 = vld [vmem:[#allocation11 + $0x50] sm:$0xff]  ;;  %v994_v63 = vld [vmem:[#allocation11 + $0x48] sm:$0xff]  ;;  %p1264_p1 = scmp.ne.s32.totalorder %s1262_s16, %s1263_s25  ;;  %p1269_p7 = scmp.lt.s32.totalorder %s1267_s11, %s1263_s25 }
  0x49   : > { %422 = vmatpush.bf16.msra.mxu1 %v876_v25  ;;  %v985_v0 = vld [vmem:[#allocation11] sm:$0xff]  ;;  %v433_v4 = vld [vmem:[#allocation8 + $0x8] sm:$0xff]  ;;  %v434_v16 = vld [vmem:[#allocation8 + $0x10] sm:$0xff] }
  0x4a   : > { %670 = vmatpush.bf16.msra.mxu2 %v990_v54  ;;  %v993_v1 = vld [vmem:[#allocation11 + $0x40] sm:$0xff]  ;;  %v441_v6 = vld [vmem:[#allocation9 + $0x8] sm:$0xff]  ;;  %v442_v17 = vld [vmem:[#allocation9 + $0x10] sm:$0xff]  ;;  %p1265_p3 = pnand %p1264_p1, %p1448_p4  ;;  %p1270_p8 = por %p1269_p7, %p1268_p12 }
  0x4b   : > { %683 = vmatpush.bf16.msra.mxu3 %v998_v55  ;;  %v432_v2 = vld [vmem:[#allocation8] sm:$0xff]  ;;  %v435_v26 = vld [vmem:[#allocation8 + $0x18] sm:$0xff] }
  0x4c   : > { %410 = vmatpush.bf16.msra.mxu0 %v864_v30  ;;  %v440_v5 = vld [vmem:[#allocation9] sm:$0xff]  ;;  %v443_v27 = vld [vmem:[#allocation9 + $0x18] sm:$0xff]  ;;  %p1266_p5 = pneg %p1265_p3 }
  0x4d   : > { %423 = vmatpush.bf16.msra.mxu1 %v868_v31  ;;  %v436_v41 = vld [vmem:[#allocation8 + $0x20] sm:$0xff] }
  0x4e   : > { %671 = vmatpush.bf16.msra.mxu2 %v989_v56  ;;  %p1271_p9 = pnand %p1270_p8, %p1266_p5 }
  0x4f   : > { %684 = vmatpush.bf16.msra.mxu3 %v997_v57 }
  0x50   : > { %411 = vmatpush.bf16.msra.mxu0 %v856_v36 }
  0x51   : > { %424 = vmatpush.bf16.msra.mxu1 %v860_v37 }
  0x52   : > { %672 = vmatpush.bf16.msra.mxu2 %v988_v58 }
  0x53   : > { %685 = vmatpush.bf16.msra.mxu3 %v996_v59 }
  0x54   : > { %412 = vmatpush.bf16.msra.mxu0 %v848_v42  ;;  %v444_v42 = vld [vmem:[#allocation9 + $0x20] sm:$0xff] }
  0x55   : > { %425 = vmatpush.bf16.msra.mxu1 %v852_v43 }
  0x56   : > { %673 = vmatpush.bf16.msra.mxu2 %v987_v60 }
  0x57   : > { %686 = vmatpush.bf16.msra.mxu3 %v995_v61 }
  0x58   : > { %413 = vmatpush.bf16.msra.mxu0 %v840_v48  ;;  %v437_v48 = vld [vmem:[#allocation8 + $0x28] sm:$0xff] }
  0x59   : > { %426 = vmatpush.bf16.msra.mxu1 %v844_v50  ;;  %v445_v50 = vld [vmem:[#allocation9 + $0x28] sm:$0xff] }
  0x5a   : > { %674 = vmatpush.bf16.msra.mxu2 %v986_v62 }
  0x5b   : > { %414 = vmatmul.bf16.vlgmr.msra.gmra.mxu0 %v309_v51  ;;  %687 = vmatpush.bf16.msra.mxu3 %v994_v63 }
  0x5c   : > { %427 = vmatmul.bf16.vlgmr.msra.gmra.mxu1 %v309_v51 }
  0x5e   : > { %675 = vmatpush.bf16.msra.mxu2 %v985_v0 }
  0x5f   : > { %688 = vmatpush.bf16.msra.mxu3 %v993_v1 }
  0xd8   : > { %v1504_v3 = vpop.f32.mrf.mxu0 }
  0xd9   : > { %v448_v7 = vperm.slane %v1504_v3, 0  ;;  %v458_v8 = vperm.slane %v1504_v3, 1  ;;  %v468_v9 = vperm.slane %v1504_v3, 2  ;;  %v478_v10 = vperm.slane %v1504_v3, 3  ;;  %v1510_v11 = vpop.f32.mrf.mxu1 }
  0xda   : > { %v450_v12 = vperm.slane %v1510_v11, 0  ;;  %v460_v13 = vperm.slane %v1510_v11, 1  ;;  %v470_v14 = vperm.slane %v1510_v11, 2  ;;  %v480_v15 = vperm.slane %v1510_v11, 3 }
  0xdb   : > { %v449_v18 = vmul.f32 %v448_v7, %v432_v2  ;;  %v454_v19 = vmul.f32 %v448_v7, %v440_v5  ;;  %v459_v20 = vmul.f32 %v458_v8, %v433_v4  ;;  %v464_v21 = vmul.f32 %v458_v8, %v441_v6 }
  0xdc   : > { %v451_v22 = vmul.f32 %v450_v12, %v440_v5  ;;  %v455_v23 = vmul.f32 %v450_v12, %v432_v2  ;;  %v461_v24 = vmul.f32 %v460_v13, %v441_v6  ;;  %v465_v25 = vmul.f32 %v460_v13, %v433_v4  ;;  %v438_v4 = vld [vmem:[#allocation8 + $0x30] sm:$0xff]  ;;  %v447_v12 = vld [vmem:[#allocation9 + $0x38] sm:$0xff] }
  0xdd   : > { %v469_v28 = vmul.f32 %v468_v9, %v434_v16  ;;  %v471_v29 = vmul.f32 %v470_v14, %v442_v17  ;;  %v474_v30 = vmul.f32 %v468_v9, %v442_v17  ;;  %v475_v31 = vmul.f32 %v470_v14, %v434_v16  ;;  %v446_v5 = vld [vmem:[#allocation9 + $0x30] sm:$0xff] }
  0xde   : > { %v452_v32 = vsub.f32 %v449_v18, %v451_v22  ;;  %v456_v33 = vadd.f32 %v455_v23, %v454_v19  ;;  %v462_v34 = vsub.f32 %v459_v20, %v461_v24  ;;  %v466_v35 = vadd.f32 %v465_v25, %v464_v21 }
  0xdf   : > { %v472_v36 = vsub.f32 %v469_v28, %v471_v29  ;;  %v476_v37 = vadd.f32 %v475_v31, %v474_v30  ;;  %v479_v38 = vmul.f32 %v478_v10, %v435_v26  ;;  %v481_v39 = vmul.f32 %v480_v15, %v443_v27 }
  0xe0   : > { %v417_v40 = vpop.f32.mrf.mxu0  ;;  %v463_v43 = vadd.f32 %v462_v34, %v452_v32  ;;  %v467_v44 = vadd.f32 %v466_v35, %v456_v33  ;;  %v484_v45 = vmul.f32 %v478_v10, %v443_v27  ;;  %v485_v46 = vmul.f32 %v480_v15, %v435_v26  ;;  %v439_v10 = vld [vmem:[#allocation8 + $0x38] sm:$0xff] }
  0xe1   : > { %v430_v47 = vpop.f32.mrf.mxu1  ;;  %v482_v51 = vsub.f32 %v479_v38, %v481_v39  ;;  %v488_v52 = vperm.slane %v1504_v3, 4  ;;  %v490_v53 = vperm.slane %v1510_v11, 4  ;;  %v498_v54 = vperm.slane %v1504_v3, 5 }
  0xe2   : > { %v473_v55 = vadd.f32 %v472_v36, %v463_v43  ;;  %v477_v56 = vadd.f32 %v476_v37, %v467_v44  ;;  %v486_v57 = vadd.f32 %v485_v46, %v484_v45  ;;  %v500_v58 = vperm.slane %v1510_v11, 5 }
  0xe3   : > { %v489_v59 = vmul.f32 %v488_v52, %v436_v41  ;;  %v491_v60 = vmul.f32 %v490_v53, %v444_v42  ;;  %v494_v61 = vmul.f32 %v488_v52, %v444_v42  ;;  %v495_v62 = vmul.f32 %v490_v53, %v436_v41 }
  0xe4   : > { %v483_v63 = vadd.f32 %v482_v51, %v473_v55  ;;  %v487_v0 = vadd.f32 %v486_v57, %v477_v56  ;;  %v499_v1 = vmul.f32 %v498_v54, %v437_v48  ;;  %v501_v2 = vmul.f32 %v500_v58, %v445_v50 }
  0xe5   : > { %v492_v6 = vsub.f32 %v489_v59, %v491_v60  ;;  %v496_v7 = vadd.f32 %v495_v62, %v494_v61  ;;  %v504_v8 = vmul.f32 %v498_v54, %v445_v50  ;;  %v505_v9 = vmul.f32 %v500_v58, %v437_v48 }
  0xe6   : > { %v502_v13 = vsub.f32 %v499_v1, %v501_v2  ;;  %v508_v14 = vperm.slane %v1504_v3, 6  ;;  %v510_v15 = vperm.slane %v1510_v11, 6  ;;  %v518_v16 = vperm.slane %v1504_v3, 7 }
  0xe7   : > { %v493_v17 = vadd.f32 %v492_v6, %v483_v63  ;;  %v497_v18 = vadd.f32 %v496_v7, %v487_v0  ;;  %v506_v19 = vadd.f32 %v505_v9, %v504_v8  ;;  %v520_v20 = vperm.slane %v1510_v11, 7 }
  0xe8   : > { %v509_v21 = vmul.f32 %v508_v14, %v438_v4  ;;  %v511_v22 = vmul.f32 %v510_v15, %v446_v5  ;;  %v514_v23 = vmul.f32 %v508_v14, %v446_v5  ;;  %v515_v24 = vmul.f32 %v510_v15, %v438_v4 }
  0xe9   : > { %v503_v25 = vadd.f32 %v502_v13, %v493_v17  ;;  %v507_v26 = vadd.f32 %v506_v19, %v497_v18  ;;  %v519_v27 = vmul.f32 %v518_v16, %v439_v10  ;;  %v521_v28 = vmul.f32 %v520_v20, %v447_v12 }
  0xea   : > { %v512_v29 = vsub.f32 %v509_v21, %v511_v22  ;;  %v516_v30 = vadd.f32 %v515_v24, %v514_v23  ;;  %v524_v31 = vmul.f32 %v518_v16, %v447_v12  ;;  %v525_v32 = vmul.f32 %v520_v20, %v439_v10 }
  0xeb   : > { %v522_v34 = vsub.f32 %v519_v27, %v521_v28 }
  0xec   : > { %v513_v33 = vadd.f32 %v512_v29, %v503_v25  ;;  %v517_v3 = vadd.f32 %v516_v30, %v507_v26  ;;  %v526_v35 = vadd.f32 %v525_v32, %v524_v31 }
  0xee   : > { %v523_v36 = vadd.f32 %v522_v34, %v513_v33  ;;  %v527_v11 = vadd.f32 %v526_v35, %v517_v3 }
  0xf0   : > { %v1004_v37 = vpack.c.bf16 %v527_v11, %v523_v36 }
  0xf2   : > { %v566_v38 = vunpack.c.l.b16 %v1004_v37  ;;  %v567_v39 = vunpack.c.h.b16 %v1004_v37 }
  0xf4   : > { %v568_v40 = vpack.c.b16 %v566_v38, %v566_v38  ;;  %v569_v41 = vpack.c.b16 %v567_v39, %v567_v39 }
  0xf6   : > { %676 = vmatmul.bf16.vlgmr.msra.gmra.mxu2 %v568_v40  ;;  %689 = vmatmul.bf16.vlgmr.msra.gmra.mxu3 %v569_v41 }
 0x179   : > { %v677_v42 = vpop.f32.mrf.mxu2  ;;  %v690_v43 = vpop.f32.mrf.mxu3 }
 0x17a   : > { %v691_v44 = vadd.f32 %v690_v43, %v677_v42 }
 0x17c   : > { %v695_v45 = vadd.f32 %v691_v44, %v1500_v49 }
 0x17e   : > { %696 = vst [vmem:[%s307_s29] sm:$0xff] %v695_v45 }
 0x17f   : > { %1274 = shalt.err (!%p1271_p9)
}
 0x180   : > { %1024 = dma.vmem_to_hbm [thread:$0]  (%p1448_p4), %s711_s30, 128, %s713_s9, %s698_s15  }
 0x181   : > { %v679_v49 = vpop.f32.mrf.mxu2  ;;  %v692_v46 = vpop.f32.mrf.mxu3 }
 0x182 PF: > { %s724_s12 = sand.u32 1, %s1309_s18   ;;  %p1573_p10 = scmp.ge.s32.totalorder %s1321_s21, 2 }
 0x183   : > { %s725_s8 = scalar_lea.sflag [#allocation5], %s724_s12 }
 0x184   : > { %p1044_p13 = pnand %p1573_p10, %p1452_p6 }
 0x186   : > { %p1045_p11 = pneg %p1044_p13 }
 0x188   : > { %1304 = dma.done.wait (%p1045_p11), %s725_s8, 128  }
 0x189   : > { %1306 = vsyncadd (%p1045_p11), %s725_s8, 4294967168  ;;  %p20_p4 = scmp.ge.s32.totalorder %s1422_s6, 4   ;;  %s1574_s18 = smov %s1313_s19 }
 0x18a   : > { %s1575_s19 = smov %s1317_s20  ;;  %s1576_s20 = smov %s1433_s10 }
 0x18b   : > { %s1577_s21 = smov %s1422_s6  ;;  %22 = sbr.rel (!%p20_p4) target bundleno = 7 (0x7), region = 101 }
 0x190   :  { %731 = vsyncpa [#allocation4], 1 }
 0x191   :  { %733 = vsyncpa [#allocation4 + $0x1], 1 }
 0x192   :  { %734 = vsyncpa [#allocation7], 1 }
 0x193   :  { %735 = vsyncpa [#allocation10], 1 }
 0x194   :  { %736 = vsyncpa [#allocation5], 1 }
 0x195   :  { %738 = vsyncpa [#allocation5 + $0x1], 1 }

</bundles_post_ra>
